<compile_context>
chip_gen: v7x
topology: tpu7x:2x2x1
jax: 0.10.0
libtpu: 0.0.40
codegen_flags: <defaults>
</compile_context>

<pallas_src>
import functools

import jax
import jax.numpy as jnp
from jax import lax
from jax.experimental import pallas as pl
from jax.experimental.pallas import tpu as pltpu


def _round_up(v, m):
    return (v + m - 1) // m * m


def _choose_time_chunk(T, Bt, Gt, Hh, w_bytes, budget_bytes=28 << 20):
    """Pick a time-chunk length so double-buffered Gi/out chunks fit in VMEM."""
    avail = max(budget_bytes - 2 * w_bytes, 1 << 20)
    per_step = 2 * Bt * (Gt + Hh) * 4          # double-buffered f32 gi + out
    return int(max(1, min(avail // per_step, T, 256)))


def gru_recurrence_kernel(gi_ref, whh_ref, bhh_ref, out_ref, h_ref, *, tt, hh):
    """One (batch_chunk, time_chunk) grid step of the GRU recurrence.

    gi_ref  : (Tt, Bt, Gt) f32   precomputed x_t @ W_ih^T + b_ih (gate g placed
                                 at lanes [g*hh, g*hh + H))
    whh_ref : (Hh, Gt)     bf16  hidden-to-hidden weights (W_hh^T), gate-placed
    bhh_ref : (1, Gt)      f32   hidden bias, gate-placed
    out_ref : (Tt, Bt, Hh) f32   per-step hidden states for this chunk
    h_ref   : (Bt, Hh)     f32   persistent hidden-state carry (VMEM scratch)
    """
    # New batch chunk -> reset the carried hidden state.
    @pl.when(pl.program_id(1) == 0)
    def _():
        h_ref[...] = jnp.zeros_like(h_ref)

    def step(t, h):
        gi = gi_ref[t]                                            # (Bt, Gt)
        # Single bf16 MXU matmul per step (f32 accumulation). Weights/bias are
        # read straight from VMEM each step — no vreg hoist, no spills.
        gh = jnp.dot(h.astype(jnp.bfloat16), whh_ref[...],
                     preferred_element_type=jnp.float32) + bhh_ref[...]
        r = jax.nn.sigmoid(gi[:, 0:hh] + gh[:, 0:hh])
        z = jax.nn.sigmoid(gi[:, hh:2 * hh] + gh[:, hh:2 * hh])
        n = jnp.tanh(gi[:, 2 * hh:3 * hh] + r * gh[:, 2 * hh:3 * hh])
        h_new = n + z * (h - n)                 # == (1-z)*n + z*h, one op less
        out_ref[t] = h_new.astype(out_ref.dtype)
        return h_new

    h_final = lax.fori_loop(0, tt, step, h_ref[...], unroll=min(tt, 8))
    h_ref[...] = h_final


def gru_forward(x, w_ih, w_hh, b_ih, b_hh, *, batch_chunks=1):
    """GRU forward. x: (B, T, D) -> (B, T, H) (all time-step hidden states)."""
    B, T, D = x.shape
    H = w_hh.shape[1]                          # w_hh: (3H, H)
    f32 = jnp.float32

    # ---- Gate / hidden layout ------------------------------------------------
    packed = (3 * H) <= 128                    # all gates share one lane block
    Hh = H if packed else _round_up(H, 128)    # gate stride == h width
    Gt = _round_up(3 * Hh, 128)                # total gate width (lane-aligned)

    # ---- Batch padding / chunking (batch_chunks>1 only helps on 2-TC chips) --
    Bt = _round_up(max(pl.cdiv(B, batch_chunks), 8), 8)
    nb = batch_chunks
    Bp = Bt * nb

    def place_gates(m, dtype):                 # (K, 3H) -> (K, Gt)
        K = m.shape[0]
        out = jnp.zeros((K, Gt), dtype)
        for g in range(3):
            out = out.at[:, g * Hh:g * Hh + H].set(
                m[:, g * H:(g + 1) * H].astype(dtype))
        return out

    wih_t = place_gates(jnp.transpose(w_ih), f32)                      # (D, Gt)
    whh_t = jnp.zeros((Hh, Gt), jnp.bfloat16).at[:H, :].set(
        place_gates(jnp.transpose(w_hh), f32).astype(jnp.bfloat16))    # (Hh, Gt)
    bih = place_gates(b_ih.reshape(1, 3 * H), f32)                     # (1, Gt)
    bhh = place_gates(b_hh.reshape(1, 3 * H), f32)                     # (1, Gt)

    # ---- Time chunking -------------------------------------------------------
    w_bytes = whh_t.size * 2 + (bih.size + bhh.size) * 4
    Tt = _choose_time_chunk(T, Bt, Gt, Hh, w_bytes)
    Tp = _round_up(T, Tt)
    nt = Tp // Tt

    # ---- Hoisted input projection (one big matmul, time-major layout) --------
    x_p = jnp.zeros((Bp, Tp, D), f32).at[:B, :T].set(x.astype(f32))
    gi = jnp.einsum('btd,dg->tbg', x_p, wih_t,
                    preferred_element_type=jnp.float32) + bih          # (Tp,Bp,Gt)

    # ---- VMEM budget ---------------------------------------------------------
    vmem_bytes = (2 * Tt * Bt * Gt * 4       # double-buffered Gi chunk
                  + 2 * Tt * Bt * Hh * 4     # double-buffered out chunk
                  + 2 * w_bytes              # resident weights / biases
                  + Bt * Hh * 4)             # h carry scratch
    vmem_limit = int(min(max(vmem_bytes + (8 << 20), 32 << 20), 60 << 20))

    kernel = functools.partial(gru_recurrence_kernel, tt=Tt, hh=Hh)

    out_tbh = pl.pallas_call(
        kernel,
        out_shape=jax.ShapeDtypeStruct((Tp, Bp, Hh), f32),
        grid=(nb, nt),
        in_specs=[
            pl.BlockSpec((Tt, Bt, Gt), lambda b, t: (t, b, 0)),   # Gi (streamed)
            pl.BlockSpec((Hh, Gt), lambda b, t: (0, 0)),          # W_hh^T (resident)
            pl.BlockSpec((1, Gt), lambda b, t: (0, 0)),           # b_hh (resident)
        ],
        out_specs=pl.BlockSpec((Tt, Bt, Hh), lambda b, t: (t, b, 0)),
        scratch_shapes=[pltpu.VMEM((Bt, Hh), f32)],               # h carry
        compiler_params=pltpu.CompilerParams(
            dimension_semantics=("parallel", "arbitrary"),
            vmem_limit_bytes=vmem_limit),
    )(gi, whh_t, bhh)

    # Slice padding off BEFORE transposing (only real bytes move).
    out = jnp.transpose(out_tbh[:T, :B, :H], (1, 0, 2))           # (B, T, H)
    return out.astype(x.dtype)


def gru_reference(x, w_ih, w_hh, b_ih, b_hh):
    """Pure-JAX f32 reference matching torch.nn.GRU (single layer, batch_first)."""
    B, T, D = x.shape
    H = w_hh.shape[1]

    def step(h, x_t):
        gi = x_t @ w_ih.T + b_ih
        gh = h @ w_hh.T + b_hh
        i_r, i_z, i_n = gi[:, :H], gi[:, H:2 * H], gi[:, 2 * H:]
        h_r, h_z, h_n = gh[:, :H], gh[:, H:2 * H], gh[:, 2 * H:]
        r = jax.nn.sigmoid(i_r + h_r)
        z = jax.nn.sigmoid(i_z + h_z)
        n = jnp.tanh(i_n + r * h_n)
        h_new = (1.0 - z) * n + z * h
        return h_new, h_new

    h0 = jnp.zeros((B, H), x.dtype)
    _, outs = jax.lax.scan(step, h0, jnp.transpose(x, (1, 0, 2)))
    return jnp.transpose(outs, (1, 0, 2))


if __name__ == "__main__":
    # Small shapes consistent with the module: batch=2, seq=8, input_dim=16, hidden=32
    B, T, D, H = 2, 8, 16, 32

    key = jax.random.PRNGKey(0)
    kx, k1, k2, k3, k4 = jax.random.split(key, 5)

    # Deterministic PyTorch-style init: U(-1/sqrt(H), 1/sqrt(H))
    bound = 1.0 / (H ** 0.5)
    x = jax.random.normal(kx, (B, T, D), dtype=jnp.float32)
    w_ih = jax.random.uniform(k1, (3 * H, D), jnp.float32, -bound, bound)
    w_hh = jax.random.uniform(k2, (3 * H, H), jnp.float32, -bound, bound)
    b_ih = jax.random.uniform(k3, (3 * H,), jnp.float32, -bound, bound)
    b_hh = jax.random.uniform(k4, (3 * H,), jnp.float32, -bound, bound)

    out = gru_forward(x, w_ih, w_hh, b_ih, b_hh)
    jax.block_until_ready(out)

    ref = gru_reference(x, w_ih, w_hh, b_ih, b_hh)
    assert out.shape == (B, T, H)
    # bf16 recurrent matmul (f32 accumulation) vs f32 reference -> loose tol.
    assert jnp.allclose(out, ref, atol=3e-2, rtol=3e-2), "mismatch vs reference"

    print("KERNEL_OK")
</pallas_src>

<mosaic_0001>
module attributes {stable_mosaic.version = 11 : i64} {
  func.func @gru_recurrence_kernel(%arg0: i32, %arg1: i32, %arg2: memref<8x8x128xf32, #tpu.memory_space<vmem>>, %arg3: memref<32x128xbf16, #tpu.memory_space<vmem>>, %arg4: memref<1x128xf32, #tpu.memory_space<vmem>>, %arg5: memref<8x8x32xf32, #tpu.memory_space<vmem>>, %arg6: memref<8x32xf32, #tpu.memory_space<vmem>>) attributes {dimension_semantics = [#tpu.dimension_semantics<parallel>, #tpu.dimension_semantics<arbitrary>], iteration_bounds = array<i64: 1, 1>, scalar_prefetch = 0 : i64, scratch_operands = 1 : i64, tpu.core_type = #tpu.core_type<tc>, window_params = [{transform_indices = @transform_0, window_bounds = array<i64: 8, 8, 128>}, {pipeline_mode = #tpu.pipeline_mode<synchronous>, transform_indices = @transform_1, window_bounds = array<i64: 32, 128>}, {pipeline_mode = #tpu.pipeline_mode<synchronous>, transform_indices = @transform_2, window_bounds = array<i64: 1, 128>}, {transform_indices = @transform_3, window_bounds = array<i64: 8, 8, 32>}]} {
    %c0_i32 = arith.constant 0 : i32
    %0 = arith.cmpi eq, %arg1, %c0_i32 : i32
    %1 = arith.extui %0 : i1 to i32
    %c0_i32_0 = arith.constant 0 : i32
    %2 = arith.cmpi ne, %1, %c0_i32_0 : i32
    scf.if %2 {
      %cst_92 = arith.constant 0.000000e+00 : f32
      %301 = vector.broadcast %cst_92 : f32 to vector<8x32xf32>
      %c0_93 = arith.constant 0 : index
      %c0_94 = arith.constant 0 : index
      %302 = vector.load %arg6[%c0_93, %c0_94] : memref<8x32xf32, #tpu.memory_space<vmem>>, vector<8x32xf32>
      tpu.vector_store %arg6[%c0_93, %c0_94], %301 {strides = array<i32>} : memref<8x32xf32, #tpu.memory_space<vmem>>, vector<8x32xf32>,
    } else {
    }
    %c0 = arith.constant 0 : index
    %c0_1 = arith.constant 0 : index
    %3 = vector.load %arg6[%c0, %c0_1] : memref<8x32xf32, #tpu.memory_space<vmem>>, vector<8x32xf32>
    %c0_i32_2 = arith.constant 0 : i32
    %4 = arith.index_cast %c0_i32_2 : i32 to index
    %c0_3 = arith.constant 0 : index
    %c0_4 = arith.constant 0 : index
    %5 = vector.load %arg2[%4, %c0_3, %c0_4] : memref<8x8x128xf32, #tpu.memory_space<vmem>>, vector<1x8x128xf32>
    %6 = vector.shape_cast %5 : vector<1x8x128xf32> to vector<8x128xf32>
    %7 = arith.truncf %3 : vector<8x32xf32> to vector<8x32xbf16>
    %c0_5 = arith.constant 0 : index
    %c0_6 = arith.constant 0 : index
    %8 = vector.load %arg3[%c0_5, %c0_6] : memref<32x128xbf16, #tpu.memory_space<vmem>>, vector<32x128xbf16>
    %cst = arith.constant dense<0.000000e+00> : vector<8x128xf32>
    %9 = tpu.matmul %7, %8, %cst {dimension_numbers = #tpu.dot_dimension_numbers<[1], [0], [0], [1], [0, 0, 1, 1], [], []>} : vector<8x32xbf16>, vector<32x128xbf16>, vector<8x128xf32> -> vector<8x128xf32>
    %c0_7 = arith.constant 0 : index
    %c0_8 = arith.constant 0 : index
    %10 = vector.load %arg4[%c0_7, %c0_8] : memref<1x128xf32, #tpu.memory_space<vmem>>, vector<1x128xf32>
    %11 = vector.broadcast %10 : vector<1x128xf32> to vector<8x128xf32>
    %12 = arith.addf %9, %11 : vector<8x128xf32>
    %13 = vector.extract_strided_slice %6 {offsets = [0, 0], sizes = [8, 32], strides = [1, 1]} : vector<8x128xf32> to vector<8x32xf32>
    %14 = vector.extract_strided_slice %12 {offsets = [0, 0], sizes = [8, 32], strides = [1, 1]} : vector<8x128xf32> to vector<8x32xf32>
    %15 = arith.addf %13, %14 : vector<8x32xf32>
    %16 = arith.negf %15 : vector<8x32xf32>
    %17 = math.exp %16 : vector<8x32xf32>
    %cst_9 = arith.constant 1.000000e+00 : f32
    %18 = vector.broadcast %cst_9 : f32 to vector<8x32xf32>
    %19 = arith.addf %18, %17 : vector<8x32xf32>
    %20 = arith.divf %18, %19 : vector<8x32xf32>
    %21 = vector.extract_strided_slice %6 {offsets = [0, 32], sizes = [8, 32], strides = [1, 1]} : vector<8x128xf32> to vector<8x32xf32>
    %22 = vector.extract_strided_slice %12 {offsets = [0, 32], sizes = [8, 32], strides = [1, 1]} : vector<8x128xf32> to vector<8x32xf32>
    %23 = arith.addf %21, %22 : vector<8x32xf32>
    %24 = arith.negf %23 : vector<8x32xf32>
    %25 = math.exp %24 : vector<8x32xf32>
    %cst_10 = arith.constant 1.000000e+00 : f32
    %26 = vector.broadcast %cst_10 : f32 to vector<8x32xf32>
    %27 = arith.addf %26, %25 : vector<8x32xf32>
    %28 = arith.divf %26, %27 : vector<8x32xf32>
    %29 = vector.extract_strided_slice %6 {offsets = [0, 64], sizes = [8, 32], strides = [1, 1]} : vector<8x128xf32> to vector<8x32xf32>
    %30 = vector.extract_strided_slice %12 {offsets = [0, 64], sizes = [8, 32], strides = [1, 1]} : vector<8x128xf32> to vector<8x32xf32>
    %31 = arith.mulf %20, %30 : vector<8x32xf32>
    %32 = arith.addf %29, %31 : vector<8x32xf32>
    %33 = math.tanh %32 : vector<8x32xf32>
    %34 = arith.subf %3, %33 : vector<8x32xf32>
    %35 = arith.mulf %28, %34 : vector<8x32xf32>
    %36 = arith.addf %33, %35 : vector<8x32xf32>
    %37 = arith.index_cast %c0_i32_2 : i32 to index
    %c0_11 = arith.constant 0 : index
    %c0_12 = arith.constant 0 : index
    %38 = vector.load %arg5[%37, %c0_11, %c0_12] : memref<8x8x32xf32, #tpu.memory_space<vmem>>, vector<1x8x32xf32>
    %39 = vector.shape_cast %38 : vector<1x8x32xf32> to vector<8x32xf32>
    %40 = vector.shape_cast %36 : vector<8x32xf32> to vector<1x8x32xf32>
    tpu.vector_store %arg5[%37, %c0_11, %c0_12], %40 {strides = array<i32>} : memref<8x8x32xf32, #tpu.memory_space<vmem>>, vector<1x8x32xf32>,
    %c1_i32 = arith.constant 1 : i32
    %41 = arith.index_cast %c1_i32 : i32 to index
    %c0_13 = arith.constant 0 : index
    %c0_14 = arith.constant 0 : index
    %42 = vector.load %arg2[%41, %c0_13, %c0_14] : memref<8x8x128xf32, #tpu.memory_space<vmem>>, vector<1x8x128xf32>
    %43 = vector.shape_cast %42 : vector<1x8x128xf32> to vector<8x128xf32>
    %44 = arith.truncf %36 : vector<8x32xf32> to vector<8x32xbf16>
    %c0_15 = arith.constant 0 : index
    %c0_16 = arith.constant 0 : index
    %45 = vector.load %arg3[%c0_15, %c0_16] : memref<32x128xbf16, #tpu.memory_space<vmem>>, vector<32x128xbf16>
    %cst_17 = arith.constant dense<0.000000e+00> : vector<8x128xf32>
    %46 = tpu.matmul %44, %45, %cst_17 {dimension_numbers = #tpu.dot_dimension_numbers<[1], [0], [0], [1], [0, 0, 1, 1], [], []>} : vector<8x32xbf16>, vector<32x128xbf16>, vector<8x128xf32> -> vector<8x128xf32>
    %c0_18 = arith.constant 0 : index
    %c0_19 = arith.constant 0 : index
    %47 = vector.load %arg4[%c0_18, %c0_19] : memref<1x128xf32, #tpu.memory_space<vmem>>, vector<1x128xf32>
    %48 = vector.broadcast %47 : vector<1x128xf32> to vector<8x128xf32>
    %49 = arith.addf %46, %48 : vector<8x128xf32>
    %50 = vector.extract_strided_slice %43 {offsets = [0, 0], sizes = [8, 32], strides = [1, 1]} : vector<8x128xf32> to vector<8x32xf32>
    %51 = vector.extract_strided_slice %49 {offsets = [0, 0], sizes = [8, 32], strides = [1, 1]} : vector<8x128xf32> to vector<8x32xf32>
    %52 = arith.addf %50, %51 : vector<8x32xf32>
    %53 = arith.negf %52 : vector<8x32xf32>
    %54 = math.exp %53 : vector<8x32xf32>
    %cst_20 = arith.constant 1.000000e+00 : f32
    %55 = vector.broadcast %cst_20 : f32 to vector<8x32xf32>
    %56 = arith.addf %55, %54 : vector<8x32xf32>
    %57 = arith.divf %55, %56 : vector<8x32xf32>
    %58 = vector.extract_strided_slice %43 {offsets = [0, 32], sizes = [8, 32], strides = [1, 1]} : vector<8x128xf32> to vector<8x32xf32>
    %59 = vector.extract_strided_slice %49 {offsets = [0, 32], sizes = [8, 32], strides = [1, 1]} : vector<8x128xf32> to vector<8x32xf32>
    %60 = arith.addf %58, %59 : vector<8x32xf32>
    %61 = arith.negf %60 : vector<8x32xf32>
    %62 = math.exp %61 : vector<8x32xf32>
    %cst_21 = arith.constant 1.000000e+00 : f32
    %63 = vector.broadcast %cst_21 : f32 to vector<8x32xf32>
    %64 = arith.addf %63, %62 : vector<8x32xf32>
    %65 = arith.divf %63, %64 : vector<8x32xf32>
    %66 = vector.extract_strided_slice %43 {offsets = [0, 64], sizes = [8, 32], strides = [1, 1]} : vector<8x128xf32> to vector<8x32xf32>
    %67 = vector.extract_strided_slice %49 {offsets = [0, 64], sizes = [8, 32], strides = [1, 1]} : vector<8x128xf32> to vector<8x32xf32>
    %68 = arith.mulf %57, %67 : vector<8x32xf32>
    %69 = arith.addf %66, %68 : vector<8x32xf32>
    %70 = math.tanh %69 : vector<8x32xf32>
    %71 = arith.subf %36, %70 : vector<8x32xf32>
    %72 = arith.mulf %65, %71 : vector<8x32xf32>
    %73 = arith.addf %70, %72 : vector<8x32xf32>
    %74 = arith.index_cast %c1_i32 : i32 to index
    %c0_22 = arith.constant 0 : index
    %c0_23 = arith.constant 0 : index
    %75 = vector.load %arg5[%74, %c0_22, %c0_23] : memref<8x8x32xf32, #tpu.memory_space<vmem>>, vector<1x8x32xf32>
    %76 = vector.shape_cast %75 : vector<1x8x32xf32> to vector<8x32xf32>
    %77 = vector.shape_cast %73 : vector<8x32xf32> to vector<1x8x32xf32>
    tpu.vector_store %arg5[%74, %c0_22, %c0_23], %77 {strides = array<i32>} : memref<8x8x32xf32, #tpu.memory_space<vmem>>, vector<1x8x32xf32>,
    %c2_i32 = arith.constant 2 : i32
    %78 = arith.index_cast %c2_i32 : i32 to index
    %c0_24 = arith.constant 0 : index
    %c0_25 = arith.constant 0 : index
    %79 = vector.load %arg2[%78, %c0_24, %c0_25] : memref<8x8x128xf32, #tpu.memory_space<vmem>>, vector<1x8x128xf32>
    %80 = vector.shape_cast %79 : vector<1x8x128xf32> to vector<8x128xf32>
    %81 = arith.truncf %73 : vector<8x32xf32> to vector<8x32xbf16>
    %c0_26 = arith.constant 0 : index
    %c0_27 = arith.constant 0 : index
    %82 = vector.load %arg3[%c0_26, %c0_27] : memref<32x128xbf16, #tpu.memory_space<vmem>>, vector<32x128xbf16>
    %cst_28 = arith.constant dense<0.000000e+00> : vector<8x128xf32>
    %83 = tpu.matmul %81, %82, %cst_28 {dimension_numbers = #tpu.dot_dimension_numbers<[1], [0], [0], [1], [0, 0, 1, 1], [], []>} : vector<8x32xbf16>, vector<32x128xbf16>, vector<8x128xf32> -> vector<8x128xf32>
    %c0_29 = arith.constant 0 : index
    %c0_30 = arith.constant 0 : index
    %84 = vector.load %arg4[%c0_29, %c0_30] : memref<1x128xf32, #tpu.memory_space<vmem>>, vector<1x128xf32>
    %85 = vector.broadcast %84 : vector<1x128xf32> to vector<8x128xf32>
    %86 = arith.addf %83, %85 : vector<8x128xf32>
    %87 = vector.extract_strided_slice %80 {offsets = [0, 0], sizes = [8, 32], strides = [1, 1]} : vector<8x128xf32> to vector<8x32xf32>
    %88 = vector.extract_strided_slice %86 {offsets = [0, 0], sizes = [8, 32], strides = [1, 1]} : vector<8x128xf32> to vector<8x32xf32>
    %89 = arith.addf %87, %88 : vector<8x32xf32>
    %90 = arith.negf %89 : vector<8x32xf32>
    %91 = math.exp %90 : vector<8x32xf32>
    %cst_31 = arith.constant 1.000000e+00 : f32
    %92 = vector.broadcast %cst_31 : f32 to vector<8x32xf32>
    %93 = arith.addf %92, %91 : vector<8x32xf32>
    %94 = arith.divf %92, %93 : vector<8x32xf32>
    %95 = vector.extract_strided_slice %80 {offsets = [0, 32], sizes = [8, 32], strides = [1, 1]} : vector<8x128xf32> to vector<8x32xf32>
    %96 = vector.extract_strided_slice %86 {offsets = [0, 32], sizes = [8, 32], strides = [1, 1]} : vector<8x128xf32> to vector<8x32xf32>
    %97 = arith.addf %95, %96 : vector<8x32xf32>
    %98 = arith.negf %97 : vector<8x32xf32>
    %99 = math.exp %98 : vector<8x32xf32>
    %cst_32 = arith.constant 1.000000e+00 : f32
    %100 = vector.broadcast %cst_32 : f32 to vector<8x32xf32>
    %101 = arith.addf %100, %99 : vector<8x32xf32>
    %102 = arith.divf %100, %101 : vector<8x32xf32>
    %103 = vector.extract_strided_slice %80 {offsets = [0, 64], sizes = [8, 32], strides = [1, 1]} : vector<8x128xf32> to vector<8x32xf32>
    %104 = vector.extract_strided_slice %86 {offsets = [0, 64], sizes = [8, 32], strides = [1, 1]} : vector<8x128xf32> to vector<8x32xf32>
    %105 = arith.mulf %94, %104 : vector<8x32xf32>
    %106 = arith.addf %103, %105 : vector<8x32xf32>
    %107 = math.tanh %106 : vector<8x32xf32>
    %108 = arith.subf %73, %107 : vector<8x32xf32>
    %109 = arith.mulf %102, %108 : vector<8x32xf32>
    %110 = arith.addf %107, %109 : vector<8x32xf32>
    %111 = arith.index_cast %c2_i32 : i32 to index
    %c0_33 = arith.constant 0 : index
    %c0_34 = arith.constant 0 : index
    %112 = vector.load %arg5[%111, %c0_33, %c0_34] : memref<8x8x32xf32, #tpu.memory_space<vmem>>, vector<1x8x32xf32>
    %113 = vector.shape_cast %112 : vector<1x8x32xf32> to vector<8x32xf32>
    %114 = vector.shape_cast %110 : vector<8x32xf32> to vector<1x8x32xf32>
    tpu.vector_store %arg5[%111, %c0_33, %c0_34], %114 {strides = array<i32>} : memref<8x8x32xf32, #tpu.memory_space<vmem>>, vector<1x8x32xf32>,
    %c3_i32 = arith.constant 3 : i32
    %115 = arith.index_cast %c3_i32 : i32 to index
    %c0_35 = arith.constant 0 : index
    %c0_36 = arith.constant 0 : index
    %116 = vector.load %arg2[%115, %c0_35, %c0_36] : memref<8x8x128xf32, #tpu.memory_space<vmem>>, vector<1x8x128xf32>
    %117 = vector.shape_cast %116 : vector<1x8x128xf32> to vector<8x128xf32>
    %118 = arith.truncf %110 : vector<8x32xf32> to vector<8x32xbf16>
    %c0_37 = arith.constant 0 : index
    %c0_38 = arith.constant 0 : index
    %119 = vector.load %arg3[%c0_37, %c0_38] : memref<32x128xbf16, #tpu.memory_space<vmem>>, vector<32x128xbf16>
    %cst_39 = arith.constant dense<0.000000e+00> : vector<8x128xf32>
    %120 = tpu.matmul %118, %119, %cst_39 {dimension_numbers = #tpu.dot_dimension_numbers<[1], [0], [0], [1], [0, 0, 1, 1], [], []>} : vector<8x32xbf16>, vector<32x128xbf16>, vector<8x128xf32> -> vector<8x128xf32>
    %c0_40 = arith.constant 0 : index
    %c0_41 = arith.constant 0 : index
    %121 = vector.load %arg4[%c0_40, %c0_41] : memref<1x128xf32, #tpu.memory_space<vmem>>, vector<1x128xf32>
    %122 = vector.broadcast %121 : vector<1x128xf32> to vector<8x128xf32>
    %123 = arith.addf %120, %122 : vector<8x128xf32>
    %124 = vector.extract_strided_slice %117 {offsets = [0, 0], sizes = [8, 32], strides = [1, 1]} : vector<8x128xf32> to vector<8x32xf32>
    %125 = vector.extract_strided_slice %123 {offsets = [0, 0], sizes = [8, 32], strides = [1, 1]} : vector<8x128xf32> to vector<8x32xf32>
    %126 = arith.addf %124, %125 : vector<8x32xf32>
    %127 = arith.negf %126 : vector<8x32xf32>
    %128 = math.exp %127 : vector<8x32xf32>
    %cst_42 = arith.constant 1.000000e+00 : f32
    %129 = vector.broadcast %cst_42 : f32 to vector<8x32xf32>
    %130 = arith.addf %129, %128 : vector<8x32xf32>
    %131 = arith.divf %129, %130 : vector<8x32xf32>
    %132 = vector.extract_strided_slice %117 {offsets = [0, 32], sizes = [8, 32], strides = [1, 1]} : vector<8x128xf32> to vector<8x32xf32>
    %133 = vector.extract_strided_slice %123 {offsets = [0, 32], sizes = [8, 32], strides = [1, 1]} : vector<8x128xf32> to vector<8x32xf32>
    %134 = arith.addf %132, %133 : vector<8x32xf32>
    %135 = arith.negf %134 : vector<8x32xf32>
    %136 = math.exp %135 : vector<8x32xf32>
    %cst_43 = arith.constant 1.000000e+00 : f32
    %137 = vector.broadcast %cst_43 : f32 to vector<8x32xf32>
    %138 = arith.addf %137, %136 : vector<8x32xf32>
    %139 = arith.divf %137, %138 : vector<8x32xf32>
    %140 = vector.extract_strided_slice %117 {offsets = [0, 64], sizes = [8, 32], strides = [1, 1]} : vector<8x128xf32> to vector<8x32xf32>
    %141 = vector.extract_strided_slice %123 {offsets = [0, 64], sizes = [8, 32], strides = [1, 1]} : vector<8x128xf32> to vector<8x32xf32>
    %142 = arith.mulf %131, %141 : vector<8x32xf32>
    %143 = arith.addf %140, %142 : vector<8x32xf32>
    %144 = math.tanh %143 : vector<8x32xf32>
    %145 = arith.subf %110, %144 : vector<8x32xf32>
    %146 = arith.mulf %139, %145 : vector<8x32xf32>
    %147 = arith.addf %144, %146 : vector<8x32xf32>
    %148 = arith.index_cast %c3_i32 : i32 to index
    %c0_44 = arith.constant 0 : index
    %c0_45 = arith.constant 0 : index
    %149 = vector.load %arg5[%148, %c0_44, %c0_45] : memref<8x8x32xf32, #tpu.memory_space<vmem>>, vector<1x8x32xf32>
    %150 = vector.shape_cast %149 : vector<1x8x32xf32> to vector<8x32xf32>
    %151 = vector.shape_cast %147 : vector<8x32xf32> to vector<1x8x32xf32>
    tpu.vector_store %arg5[%148, %c0_44, %c0_45], %151 {strides = array<i32>} : memref<8x8x32xf32, #tpu.memory_space<vmem>>, vector<1x8x32xf32>,
    %c4_i32 = arith.constant 4 : i32
    %152 = arith.index_cast %c4_i32 : i32 to index
    %c0_46 = arith.constant 0 : index
    %c0_47 = arith.constant 0 : index
    %153 = vector.load %arg2[%152, %c0_46, %c0_47] : memref<8x8x128xf32, #tpu.memory_space<vmem>>, vector<1x8x128xf32>
    %154 = vector.shape_cast %153 : vector<1x8x128xf32> to vector<8x128xf32>
    %155 = arith.truncf %147 : vector<8x32xf32> to vector<8x32xbf16>
    %c0_48 = arith.constant 0 : index
    %c0_49 = arith.constant 0 : index
    %156 = vector.load %arg3[%c0_48, %c0_49] : memref<32x128xbf16, #tpu.memory_space<vmem>>, vector<32x128xbf16>
    %cst_50 = arith.constant dense<0.000000e+00> : vector<8x128xf32>
    %157 = tpu.matmul %155, %156, %cst_50 {dimension_numbers = #tpu.dot_dimension_numbers<[1], [0], [0], [1], [0, 0, 1, 1], [], []>} : vector<8x32xbf16>, vector<32x128xbf16>, vector<8x128xf32> -> vector<8x128xf32>
    %c0_51 = arith.constant 0 : index
    %c0_52 = arith.constant 0 : index
    %158 = vector.load %arg4[%c0_51, %c0_52] : memref<1x128xf32, #tpu.memory_space<vmem>>, vector<1x128xf32>
    %159 = vector.broadcast %158 : vector<1x128xf32> to vector<8x128xf32>
    %160 = arith.addf %157, %159 : vector<8x128xf32>
    %161 = vector.extract_strided_slice %154 {offsets = [0, 0], sizes = [8, 32], strides = [1, 1]} : vector<8x128xf32> to vector<8x32xf32>
    %162 = vector.extract_strided_slice %160 {offsets = [0, 0], sizes = [8, 32], strides = [1, 1]} : vector<8x128xf32> to vector<8x32xf32>
    %163 = arith.addf %161, %162 : vector<8x32xf32>
    %164 = arith.negf %163 : vector<8x32xf32>
    %165 = math.exp %164 : vector<8x32xf32>
    %cst_53 = arith.constant 1.000000e+00 : f32
    %166 = vector.broadcast %cst_53 : f32 to vector<8x32xf32>
    %167 = arith.addf %166, %165 : vector<8x32xf32>
    %168 = arith.divf %166, %167 : vector<8x32xf32>
    %169 = vector.extract_strided_slice %154 {offsets = [0, 32], sizes = [8, 32], strides = [1, 1]} : vector<8x128xf32> to vector<8x32xf32>
    %170 = vector.extract_strided_slice %160 {offsets = [0, 32], sizes = [8, 32], strides = [1, 1]} : vector<8x128xf32> to vector<8x32xf32>
    %171 = arith.addf %169, %170 : vector<8x32xf32>
    %172 = arith.negf %171 : vector<8x32xf32>
    %173 = math.exp %172 : vector<8x32xf32>
    %cst_54 = arith.constant 1.000000e+00 : f32
    %174 = vector.broadcast %cst_54 : f32 to vector<8x32xf32>
    %175 = arith.addf %174, %173 : vector<8x32xf32>
    %176 = arith.divf %174, %175 : vector<8x32xf32>
    %177 = vector.extract_strided_slice %154 {offsets = [0, 64], sizes = [8, 32], strides = [1, 1]} : vector<8x128xf32> to vector<8x32xf32>
    %178 = vector.extract_strided_slice %160 {offsets = [0, 64], sizes = [8, 32], strides = [1, 1]} : vector<8x128xf32> to vector<8x32xf32>
    %179 = arith.mulf %168, %178 : vector<8x32xf32>
    %180 = arith.addf %177, %179 : vector<8x32xf32>
    %181 = math.tanh %180 : vector<8x32xf32>
    %182 = arith.subf %147, %181 : vector<8x32xf32>
    %183 = arith.mulf %176, %182 : vector<8x32xf32>
    %184 = arith.addf %181, %183 : vector<8x32xf32>
    %185 = arith.index_cast %c4_i32 : i32 to index
    %c0_55 = arith.constant 0 : index
    %c0_56 = arith.constant 0 : index
    %186 = vector.load %arg5[%185, %c0_55, %c0_56] : memref<8x8x32xf32, #tpu.memory_space<vmem>>, vector<1x8x32xf32>
    %187 = vector.shape_cast %186 : vector<1x8x32xf32> to vector<8x32xf32>
    %188 = vector.shape_cast %184 : vector<8x32xf32> to vector<1x8x32xf32>
    tpu.vector_store %arg5[%185, %c0_55, %c0_56], %188 {strides = array<i32>} : memref<8x8x32xf32, #tpu.memory_space<vmem>>, vector<1x8x32xf32>,
    %c5_i32 = arith.constant 5 : i32
    %189 = arith.index_cast %c5_i32 : i32 to index
    %c0_57 = arith.constant 0 : index
    %c0_58 = arith.constant 0 : index
    %190 = vector.load %arg2[%189, %c0_57, %c0_58] : memref<8x8x128xf32, #tpu.memory_space<vmem>>, vector<1x8x128xf32>
    %191 = vector.shape_cast %190 : vector<1x8x128xf32> to vector<8x128xf32>
    %192 = arith.truncf %184 : vector<8x32xf32> to vector<8x32xbf16>
    %c0_59 = arith.constant 0 : index
    %c0_60 = arith.constant 0 : index
    %193 = vector.load %arg3[%c0_59, %c0_60] : memref<32x128xbf16, #tpu.memory_space<vmem>>, vector<32x128xbf16>
    %cst_61 = arith.constant dense<0.000000e+00> : vector<8x128xf32>
    %194 = tpu.matmul %192, %193, %cst_61 {dimension_numbers = #tpu.dot_dimension_numbers<[1], [0], [0], [1], [0, 0, 1, 1], [], []>} : vector<8x32xbf16>, vector<32x128xbf16>, vector<8x128xf32> -> vector<8x128xf32>
    %c0_62 = arith.constant 0 : index
    %c0_63 = arith.constant 0 : index
    %195 = vector.load %arg4[%c0_62, %c0_63] : memref<1x128xf32, #tpu.memory_space<vmem>>, vector<1x128xf32>
    %196 = vector.broadcast %195 : vector<1x128xf32> to vector<8x128xf32>
    %197 = arith.addf %194, %196 : vector<8x128xf32>
    %198 = vector.extract_strided_slice %191 {offsets = [0, 0], sizes = [8, 32], strides = [1, 1]} : vector<8x128xf32> to vector<8x32xf32>
    %199 = vector.extract_strided_slice %197 {offsets = [0, 0], sizes = [8, 32], strides = [1, 1]} : vector<8x128xf32> to vector<8x32xf32>
    %200 = arith.addf %198, %199 : vector<8x32xf32>
    %201 = arith.negf %200 : vector<8x32xf32>
    %202 = math.exp %201 : vector<8x32xf32>
    %cst_64 = arith.constant 1.000000e+00 : f32
    %203 = vector.broadcast %cst_64 : f32 to vector<8x32xf32>
    %204 = arith.addf %203, %202 : vector<8x32xf32>
    %205 = arith.divf %203, %204 : vector<8x32xf32>
    %206 = vector.extract_strided_slice %191 {offsets = [0, 32], sizes = [8, 32], strides = [1, 1]} : vector<8x128xf32> to vector<8x32xf32>
    %207 = vector.extract_strided_slice %197 {offsets = [0, 32], sizes = [8, 32], strides = [1, 1]} : vector<8x128xf32> to vector<8x32xf32>
    %208 = arith.addf %206, %207 : vector<8x32xf32>
    %209 = arith.negf %208 : vector<8x32xf32>
    %210 = math.exp %209 : vector<8x32xf32>
    %cst_65 = arith.constant 1.000000e+00 : f32
    %211 = vector.broadcast %cst_65 : f32 to vector<8x32xf32>
    %212 = arith.addf %211, %210 : vector<8x32xf32>
    %213 = arith.divf %211, %212 : vector<8x32xf32>
    %214 = vector.extract_strided_slice %191 {offsets = [0, 64], sizes = [8, 32], strides = [1, 1]} : vector<8x128xf32> to vector<8x32xf32>
    %215 = vector.extract_strided_slice %197 {offsets = [0, 64], sizes = [8, 32], strides = [1, 1]} : vector<8x128xf32> to vector<8x32xf32>
    %216 = arith.mulf %205, %215 : vector<8x32xf32>
    %217 = arith.addf %214, %216 : vector<8x32xf32>
    %218 = math.tanh %217 : vector<8x32xf32>
    %219 = arith.subf %184, %218 : vector<8x32xf32>
    %220 = arith.mulf %213, %219 : vector<8x32xf32>
    %221 = arith.addf %218, %220 : vector<8x32xf32>
    %222 = arith.index_cast %c5_i32 : i32 to index
    %c0_66 = arith.constant 0 : index
    %c0_67 = arith.constant 0 : index
    %223 = vector.load %arg5[%222, %c0_66, %c0_67] : memref<8x8x32xf32, #tpu.memory_space<vmem>>, vector<1x8x32xf32>
    %224 = vector.shape_cast %223 : vector<1x8x32xf32> to vector<8x32xf32>
    %225 = vector.shape_cast %221 : vector<8x32xf32> to vector<1x8x32xf32>
    tpu.vector_store %arg5[%222, %c0_66, %c0_67], %225 {strides = array<i32>} : memref<8x8x32xf32, #tpu.memory_space<vmem>>, vector<1x8x32xf32>,
    %c6_i32 = arith.constant 6 : i32
    %226 = arith.index_cast %c6_i32 : i32 to index
    %c0_68 = arith.constant 0 : index
    %c0_69 = arith.constant 0 : index
    %227 = vector.load %arg2[%226, %c0_68, %c0_69] : memref<8x8x128xf32, #tpu.memory_space<vmem>>, vector<1x8x128xf32>
    %228 = vector.shape_cast %227 : vector<1x8x128xf32> to vector<8x128xf32>
    %229 = arith.truncf %221 : vector<8x32xf32> to vector<8x32xbf16>
    %c0_70 = arith.constant 0 : index
    %c0_71 = arith.constant 0 : index
    %230 = vector.load %arg3[%c0_70, %c0_71] : memref<32x128xbf16, #tpu.memory_space<vmem>>, vector<32x128xbf16>
    %cst_72 = arith.constant dense<0.000000e+00> : vector<8x128xf32>
    %231 = tpu.matmul %229, %230, %cst_72 {dimension_numbers = #tpu.dot_dimension_numbers<[1], [0], [0], [1], [0, 0, 1, 1], [], []>} : vector<8x32xbf16>, vector<32x128xbf16>, vector<8x128xf32> -> vector<8x128xf32>
    %c0_73 = arith.constant 0 : index
    %c0_74 = arith.constant 0 : index
    %232 = vector.load %arg4[%c0_73, %c0_74] : memref<1x128xf32, #tpu.memory_space<vmem>>, vector<1x128xf32>
    %233 = vector.broadcast %232 : vector<1x128xf32> to vector<8x128xf32>
    %234 = arith.addf %231, %233 : vector<8x128xf32>
    %235 = vector.extract_strided_slice %228 {offsets = [0, 0], sizes = [8, 32], strides = [1, 1]} : vector<8x128xf32> to vector<8x32xf32>
    %236 = vector.extract_strided_slice %234 {offsets = [0, 0], sizes = [8, 32], strides = [1, 1]} : vector<8x128xf32> to vector<8x32xf32>
    %237 = arith.addf %235, %236 : vector<8x32xf32>
    %238 = arith.negf %237 : vector<8x32xf32>
    %239 = math.exp %238 : vector<8x32xf32>
    %cst_75 = arith.constant 1.000000e+00 : f32
    %240 = vector.broadcast %cst_75 : f32 to vector<8x32xf32>
    %241 = arith.addf %240, %239 : vector<8x32xf32>
    %242 = arith.divf %240, %241 : vector<8x32xf32>
    %243 = vector.extract_strided_slice %228 {offsets = [0, 32], sizes = [8, 32], strides = [1, 1]} : vector<8x128xf32> to vector<8x32xf32>
    %244 = vector.extract_strided_slice %234 {offsets = [0, 32], sizes = [8, 32], strides = [1, 1]} : vector<8x128xf32> to vector<8x32xf32>
    %245 = arith.addf %243, %244 : vector<8x32xf32>
    %246 = arith.negf %245 : vector<8x32xf32>
    %247 = math.exp %246 : vector<8x32xf32>
    %cst_76 = arith.constant 1.000000e+00 : f32
    %248 = vector.broadcast %cst_76 : f32 to vector<8x32xf32>
    %249 = arith.addf %248, %247 : vector<8x32xf32>
    %250 = arith.divf %248, %249 : vector<8x32xf32>
    %251 = vector.extract_strided_slice %228 {offsets = [0, 64], sizes = [8, 32], strides = [1, 1]} : vector<8x128xf32> to vector<8x32xf32>
    %252 = vector.extract_strided_slice %234 {offsets = [0, 64], sizes = [8, 32], strides = [1, 1]} : vector<8x128xf32> to vector<8x32xf32>
    %253 = arith.mulf %242, %252 : vector<8x32xf32>
    %254 = arith.addf %251, %253 : vector<8x32xf32>
    %255 = math.tanh %254 : vector<8x32xf32>
    %256 = arith.subf %221, %255 : vector<8x32xf32>
    %257 = arith.mulf %250, %256 : vector<8x32xf32>
    %258 = arith.addf %255, %257 : vector<8x32xf32>
    %259 = arith.index_cast %c6_i32 : i32 to index
    %c0_77 = arith.constant 0 : index
    %c0_78 = arith.constant 0 : index
    %260 = vector.load %arg5[%259, %c0_77, %c0_78] : memref<8x8x32xf32, #tpu.memory_space<vmem>>, vector<1x8x32xf32>
    %261 = vector.shape_cast %260 : vector<1x8x32xf32> to vector<8x32xf32>
    %262 = vector.shape_cast %258 : vector<8x32xf32> to vector<1x8x32xf32>
    tpu.vector_store %arg5[%259, %c0_77, %c0_78], %262 {strides = array<i32>} : memref<8x8x32xf32, #tpu.memory_space<vmem>>, vector<1x8x32xf32>,
    %c7_i32 = arith.constant 7 : i32
    %263 = arith.index_cast %c7_i32 : i32 to index
    %c0_79 = arith.constant 0 : index
    %c0_80 = arith.constant 0 : index
    %264 = vector.load %arg2[%263, %c0_79, %c0_80] : memref<8x8x128xf32, #tpu.memory_space<vmem>>, vector<1x8x128xf32>
    %265 = vector.shape_cast %264 : vector<1x8x128xf32> to vector<8x128xf32>
    %266 = arith.truncf %258 : vector<8x32xf32> to vector<8x32xbf16>
    %c0_81 = arith.constant 0 : index
    %c0_82 = arith.constant 0 : index
    %267 = vector.load %arg3[%c0_81, %c0_82] : memref<32x128xbf16, #tpu.memory_space<vmem>>, vector<32x128xbf16>
    %cst_83 = arith.constant dense<0.000000e+00> : vector<8x128xf32>
    %268 = tpu.matmul %266, %267, %cst_83 {dimension_numbers = #tpu.dot_dimension_numbers<[1], [0], [0], [1], [0, 0, 1, 1], [], []>} : vector<8x32xbf16>, vector<32x128xbf16>, vector<8x128xf32> -> vector<8x128xf32>
    %c0_84 = arith.constant 0 : index
    %c0_85 = arith.constant 0 : index
    %269 = vector.load %arg4[%c0_84, %c0_85] : memref<1x128xf32, #tpu.memory_space<vmem>>, vector<1x128xf32>
    %270 = vector.broadcast %269 : vector<1x128xf32> to vector<8x128xf32>
    %271 = arith.addf %268, %270 : vector<8x128xf32>
    %272 = vector.extract_strided_slice %265 {offsets = [0, 0], sizes = [8, 32], strides = [1, 1]} : vector<8x128xf32> to vector<8x32xf32>
    %273 = vector.extract_strided_slice %271 {offsets = [0, 0], sizes = [8, 32], strides = [1, 1]} : vector<8x128xf32> to vector<8x32xf32>
    %274 = arith.addf %272, %273 : vector<8x32xf32>
    %275 = arith.negf %274 : vector<8x32xf32>
    %276 = math.exp %275 : vector<8x32xf32>
    %cst_86 = arith.constant 1.000000e+00 : f32
    %277 = vector.broadcast %cst_86 : f32 to vector<8x32xf32>
    %278 = arith.addf %277, %276 : vector<8x32xf32>
    %279 = arith.divf %277, %278 : vector<8x32xf32>
    %280 = vector.extract_strided_slice %265 {offsets = [0, 32], sizes = [8, 32], strides = [1, 1]} : vector<8x128xf32> to vector<8x32xf32>
    %281 = vector.extract_strided_slice %271 {offsets = [0, 32], sizes = [8, 32], strides = [1, 1]} : vector<8x128xf32> to vector<8x32xf32>
    %282 = arith.addf %280, %281 : vector<8x32xf32>
    %283 = arith.negf %282 : vector<8x32xf32>
    %284 = math.exp %283 : vector<8x32xf32>
    %cst_87 = arith.constant 1.000000e+00 : f32
    %285 = vector.broadcast %cst_87 : f32 to vector<8x32xf32>
    %286 = arith.addf %285, %284 : vector<8x32xf32>
    %287 = arith.divf %285, %286 : vector<8x32xf32>
    %288 = vector.extract_strided_slice %265 {offsets = [0, 64], sizes = [8, 32], strides = [1, 1]} : vector<8x128xf32> to vector<8x32xf32>
    %289 = vector.extract_strided_slice %271 {offsets = [0, 64], sizes = [8, 32], strides = [1, 1]} : vector<8x128xf32> to vector<8x32xf32>
    %290 = arith.mulf %279, %289 : vector<8x32xf32>
    %291 = arith.addf %288, %290 : vector<8x32xf32>
    %292 = math.tanh %291 : vector<8x32xf32>
    %293 = arith.subf %258, %292 : vector<8x32xf32>
    %294 = arith.mulf %287, %293 : vector<8x32xf32>
    %295 = arith.addf %292, %294 : vector<8x32xf32>
    %296 = arith.index_cast %c7_i32 : i32 to index
    %c0_88 = arith.constant 0 : index
    %c0_89 = arith.constant 0 : index
    %297 = vector.load %arg5[%296, %c0_88, %c0_89] : memref<8x8x32xf32, #tpu.memory_space<vmem>>, vector<1x8x32xf32>
    %298 = vector.shape_cast %297 : vector<1x8x32xf32> to vector<8x32xf32>
    %299 = vector.shape_cast %295 : vector<8x32xf32> to vector<1x8x32xf32>
    tpu.vector_store %arg5[%296, %c0_88, %c0_89], %299 {strides = array<i32>} : memref<8x8x32xf32, #tpu.memory_space<vmem>>, vector<1x8x32xf32>,
    %c8_i32 = arith.constant 8 : i32
    %c0_90 = arith.constant 0 : index
    %c0_91 = arith.constant 0 : index
    %300 = vector.load %arg6[%c0_90, %c0_91] : memref<8x32xf32, #tpu.memory_space<vmem>>, vector<8x32xf32>
    tpu.vector_store %arg6[%c0_90, %c0_91], %295 {strides = array<i32>} : memref<8x32xf32, #tpu.memory_space<vmem>>, vector<8x32xf32>,
    return
  }
  func.func @transform_0(%arg0: i32, %arg1: i32) -> (i32, i32, i32) {
    %c0_i32 = arith.constant 0 : i32
    %c0_i32_0 = arith.constant 0 : i32
    return %arg1, %arg0, %c0_i32 : i32, i32, i32
  }
  func.func @transform_1(%arg0: i32, %arg1: i32) -> (i32, i32) {
    %c0_i32 = arith.constant 0 : i32
    %c0_i32_0 = arith.constant 0 : i32
    %c0_i32_1 = arith.constant 0 : i32
    return %c0_i32, %c0_i32_0 : i32, i32
  }
  func.func @transform_2(%arg0: i32, %arg1: i32) -> (i32, i32) {
    %c0_i32 = arith.constant 0 : i32
    %c0_i32_0 = arith.constant 0 : i32
    %c0_i32_1 = arith.constant 0 : i32
    return %c0_i32, %c0_i32_0 : i32, i32
  }
  func.func @transform_3(%arg0: i32, %arg1: i32) -> (i32, i32, i32) {
    %c0_i32 = arith.constant 0 : i32
    %c0_i32_0 = arith.constant 0 : i32
    return %arg1, %arg0, %c0_i32 : i32, i32, i32
  }
}

</mosaic_0001>

<bundles_post_ra>
// kernel: tpu_custom_call.1
= control target key start
LH: loop header
LB: loop body
LE: loop exit
PB: predicated region body
PF: predicated region fallthrough
CT: control target
= control target key end

     0   :  { %8 = vsyncpa [#allocation4], 0  ;;  %s1424_s0 = inlined_call_operand.hbm [shape: f32[8,8,128], index: 0, kind: input, shape index: {}]   ;;  %s1425_s1 = inlined_call_operand.hbm [shape: bf16[32,128], index: 1, kind: input, shape index: {}]   ;;  %s1426_s2 = inlined_call_operand.vmem [shape: f32[1,128], index: 2, kind: input, shape index: {}]   ;;  %s1427_s3 = inlined_call_operand.hbm [shape: f32[8,8,32], index: 3, kind: output, shape index: {}]  }
   0x1   :  { %9 = vsyncpa [#allocation7], 0 }
   0x2   :  { %10 = vsyncpa [#allocation5], 0  ;;  %s1201_s12 = smov [#allocation3]   ;;  %s1129_s16 = scalar_lea.hbm %s1424_s0, 1024 }
   0x3   :  { %s16_s13 = sshll.u32 %s1201_s12, 4  ;;  %p1130_p0 = scmp.ne.s32.totalorder %s1424_s0, %s1129_s16  ;;  %s17_s13 = int_to_ptr.vmem [resolvable:$true] %s16_s13 }
   0x4   :  { %p1133_p1 = scmp.lt.u32.totalorder %s1129_s16, %s1424_s0 }
   0x6   :  { %p1135_p2 = pnand %p1133_p1, %p1130_p0 }
   0x8   :  { %1138 = shalt.err (!%p1135_p2)
}
   0x9   :  { %s1139_s21 = scalar_lea.vmem %s17_s13, 1024  ;;  %p1144_p4 = scmp.lt.s32.totalorder %s17_s13, %s17_s13 }
   0xa   :  { %p1140_p3 = scmp.ne.s32.totalorder %s17_s13, %s1139_s21  ;;  %p1145_p5 = scmp.lt.s32.totalorder %s1139_s21, %s1139_s21 }
   0xc   :  { %p1146_p6 = por %p1145_p5, %p1144_p4 }
   0xe   :  { %p1147_p7 = pnand %p1146_p6, %p1140_p3 }
  0x10   :  { %1150 = shalt.err (!%p1147_p7)
}
  0x11   :  { %s1202_s22 = smov 128   ;;  %s1203_s23 = smov 8  }
  0x12   :  { %22 = dma.hbm_to_vmem [thread:$0]  %s1424_s0, 1024, %s17_s13, [#allocation4], %s1202_s22, %s1202_s22, %s1203_s23  }
  0x13   :  { %s1204_s26 = smov [#allocation6]   ;;  %s1151_s30 = scalar_lea.hbm %s1425_s1, 256 }
  0x14   :  { %s28_s27 = sshll.u32 %s1204_s26, 4  ;;  %p1152_p8 = scmp.ne.s32.totalorder %s1425_s1, %s1151_s30  ;;  %s29_s27 = int_to_ptr.vmem [resolvable:$true] %s28_s27 }
  0x15   :  { %p1155_p9 = scmp.lt.u32.totalorder %s1151_s30, %s1425_s1 }
  0x17   :  { %p1157_p10 = pnand %p1155_p9, %p1152_p8 }
  0x19   :  { %1160 = shalt.err (!%p1157_p10)
}
  0x1a   :  { %s1161_s8 = scalar_lea.vmem %s29_s27, 256  ;;  %p1166_p12 = scmp.lt.s32.totalorder %s29_s27, %s29_s27 }
  0x1b   :  { %p1162_p11 = scmp.ne.s32.totalorder %s29_s27, %s1161_s8  ;;  %p1167_p13 = scmp.lt.s32.totalorder %s1161_s8, %s1161_s8 }
  0x1d   :  { %p1168_p0 = por %p1167_p13, %p1166_p12 }
  0x1f   :  { %p1169_p1 = pnand %p1168_p0, %p1162_p11 }
  0x21   :  { %1172 = shalt.err (!%p1169_p1)
}
  0x22   :  { %s1205_s0 = smov 64   ;;  %s1206_s9 = smov 4  }
  0x23   :  { %34 = dma.hbm_to_vmem [thread:$0]  %s1425_s1, 256, %s29_s27, [#allocation7], %s1205_s0, %s1205_s0, %s1206_s9  }
  0x24   :  { %1195 = dma.done.wait [#allocation4], 1024  }
  0x25   :  { %1196 = vsyncadd [#allocation4], 4294966272 }
  0x26   :  { %1197 = dma.done.wait [#allocation7], 256  }
  0x27   :  { %1198 = vsyncadd [#allocation7], 4294967040  ;;  %vm48_vm0 = vcmask 261120   ;;  %v1207_v0 = vmov 0.0   ;;  %vm1208_vm1 = vmmov 0   ;;  %v1065_v1 = vld [vmem:[#allocation6] sm:$0xff]  }
  0x28   :  { %990 = vmatprep.subr.bf16.mxu0 %v1207_v0  ;;  %994 = vmatprep.mubr.msk.bf16.mxu0 %vm1208_vm1, %v1207_v0  ;;  %49 = vst.msk [vmem:[#allocation2] sm:$0xff] %vm48_vm0, %v1207_v0  ;;  %v1066_v2 = vld [vmem:[#allocation6 + $0x8] sm:$0xff]   ;;  %v1277_v5 = vld [vmem:[%s1426_s2] ss:$0 sm:$0xff]  ;;  %v51_v11 = vld [vmem:[#allocation3] sm:$0xff]  ;;  %s1209_s2 = smov 32  }
  0x29   :  { %998 = vmatprep.subr.bf16.mxu1 %v1207_v0  ;;  %1002 = vmatprep.mubr.msk.bf16.mxu1 %vm1208_vm1, %v1207_v0  ;;  %v1067_v24 = vld [vmem:[#allocation6] sm:$0xff]   ;;  %v1068_v25 = vld [vmem:[#allocation6 + $0x8] sm:$0xff]   ;;  %s1210_s13 = smov 96   ;;  %v266_v62 = vld [vmem:[#allocation3 + $0x10] sm:$0xff]  ;;  %s1211_s14 = smov [#allocation8]  }
  0x2a   :  { %991 = vmatpush3.bf16.msra.mxu0 %v1065_v1  ;;  %999 = vmatpush3.bf16.msra.mxu1 %v1067_v24  ;;  %v159_v37 = vld [vmem:[#allocation3 + $0x8] sm:$0xff]  ;;  %v1069_v49 = vld [vmem:[#allocation6] sm:$0xff]   ;;  %s913_s15 = sshll.u32 %s1211_s14, 4  ;;  %s914_s15 = int_to_ptr.vmem [resolvable:$true] %s913_s15 }
  0x2b   :  { %992 = vmatprep.subr.bf16.mxu0 %v1207_v0  ;;  %1000 = vmatprep.subr.bf16.mxu1 %v1207_v0  ;;  %v1070_v50 = vld [vmem:[#allocation6 + $0x8] sm:$0xff]   ;;  %s1173_s16 = scalar_lea.vmem %s914_s15, 1024  ;;  %p1178_p3 = scmp.lt.s32.totalorder %s914_s15, %s914_s15 }
  0x2c   :  { %p1174_p2 = scmp.ne.s32.totalorder %s914_s15, %s1173_s16  ;;  %p1179_p4 = scmp.lt.s32.totalorder %s1173_s16, %s1173_s16 }
  0x2e   :  { %993 = vmatpush3.bf16.msra.mxu0 %v1066_v2  ;;  %1001 = vmatpush3.bf16.msra.mxu1 %v1068_v25  ;;  %v373_v25 = vld [vmem:[#allocation3 + $0x18] sm:$0xff]  ;;  %p1180_p5 = por %p1179_p4, %p1178_p3 }
  0x2f   :  { %v50_v3 = vld [vmem:[#allocation2] sm:$0xff]  ;;  %1006 = vmatprep.subr.bf16.mxu0 %v1207_v0  ;;  %1014 = vmatprep.subr.bf16.mxu1 %v1207_v0 }
  0x30   :  { %v52_v4 = vpack.c.bf16 %v50_v3, %v50_v3  ;;  %p1181_p6 = pnand %p1180_p5, %p1174_p2 }
  0x32   :  { %995 = vmatmul.mubr.msk.bf16.vlgmr.msra.gmra.mrb[0].mxu0 %vm48_vm0, %v52_v4 }
  0x33   :  { %1010 = vmatprep.mubr.msk.bf16.mxu0 %vm1208_vm1, %v1207_v0  ;;  %1007 = vmatpush3.bf16.msra.mxu0 %v1069_v49 }
  0x34   :  { %1008 = vmatprep.subr.bf16.mxu0 %v1207_v0 }
  0x37   :  { %1009 = vmatpush3.bf16.msra.mxu0 %v1070_v50 }
  0x38   :  { %1022 = vmatprep.subr.bf16.mxu0 %v1207_v0 }
 0x105   :  { %v114_v6 = vpop.f32.mrb[0].mxu0 }
 0x106   :  { %v115_v7 = vadd.f32 %v1277_v5, %v114_v6  ;;  %v996_v8 = vpop.f32.mrb[1].mxu0 }
 0x107   :  { %v117_v9 = vpop.f32.mrb[2].mxu0 }
 0x108   :  { %128 = vrot.lane.b32.xlu0 %v115_v7, %s1205_s0  ;;  %v997_v10 = vpop.f32.mrb[3].mxu0  ;;  %v120_v12 = vadd.f32 %v115_v7, %v51_v11 }
 0x10a   :  { %v930_v13 = vmul.f32 -1.442695, %v120_v12  ;;  %v1071_v12 = vld [vmem:[#allocation6] sm:$0xff]  }
 0x10c   :  { %1081 = vpow2.f32 %v930_v13  ;;  %v1072_v13 = vld [vmem:[#allocation6 + $0x8] sm:$0xff]  }
 0x116   :  { %v1082_v14 = vpop.eup %1081 }
 0x117   :  { %v124_v15 = vadd.f32 1.0, %v1082_v14 }
 0x119   :  { %1083 = vrcp.f32 %v124_v15 }
 0x123   :  { %v1084_v16 = vpop.eup %1083 }
 0x17a   :  { %v129_v17 = vpop.permute.xlu0 %128 }
 0x17b   :  { %v131_v18 = vmul.f32 %v1084_v16, %v129_v17 }
 0x17d   :  { %133 = vrot.lane.b32.xlu0 %v131_v18, %s1205_s0 }
 0x1ef   :  { %v134_v19 = vpop.permute.xlu0 %133 }
 0x1f0   :  { %v136_v20 = vadd.f32 %v134_v19, %v51_v11 }
 0x1f2   :  { %1085 = vtanh.f32 %v136_v20 }
 0x1fc   :  { %v1086_v21 = vpop.eup %1085 }
 0x1fd   :  { %139 = vrot.lane.b32.xlu1 %v1086_v21, %s1205_s0 }
 0x26f   :  { %v140_v22 = vpop.permute.xlu1 %139 }
 0x270   :  { %v142_v23 = vsub.f32 %v50_v3, %v140_v22 }
 0x272   :  { %144 = vrot.lane.b32.xlu1 %v142_v23, %s1209_s2 }
 0x2e4   :  { %v145_v26 = vpop.permute.xlu1 %144 }
 0x2e5   :  { %v147_v27 = vmul.f32 %v1084_v16, %v145_v26 }
 0x2e7   :  { %149 = vrot.lane.b32.xlu0 %v147_v27, %s1209_s2 }
 0x359   :  { %v150_v28 = vpop.permute.xlu0 %149 }
 0x35a   :  { %v1287_v29 = vadd.f32 %v1086_v21, %v150_v28 }
 0x35c   :  { %v160_v30 = vpack.c.bf16 %v1287_v29, %v1287_v29 }
 0x35e   :  { %173 = vrot.lane.b32.xlu1 %v160_v30, %s1205_s0 }
 0x3d0   :  { %v174_v31 = vpop.permute.xlu1 %173 }
 0x3d1   :  { %1003 = vmatmul.mubr.msk.bf16.vlgmr.msra.gmra.mrb[0].mxu1 %vm48_vm0, %v174_v31 }
 0x3d2   :  { %1018 = vmatprep.mubr.msk.bf16.mxu1 %vm1208_vm1, %v1207_v0  ;;  %1015 = vmatpush3.bf16.msra.mxu1 %v1071_v12 }
 0x3d3   :  { %1016 = vmatprep.subr.bf16.mxu1 %v1207_v0 }
 0x3d6   :  { %1017 = vmatpush3.bf16.msra.mxu1 %v1072_v13 }
 0x3d7   :  { %1030 = vmatprep.subr.bf16.mxu1 %v1207_v0 }
 0x4a4   :  { %v224_v32 = vpop.f32.mrb[0].mxu1 }
 0x4a5   :  { %v225_v33 = vadd.f32 %v1277_v5, %v224_v32  ;;  %v1004_v34 = vpop.f32.mrb[1].mxu1 }
 0x4a6   :  { %v227_v35 = vpop.f32.mrb[2].mxu1 }
 0x4a7   :  { %238 = vrot.lane.b32.xlu0 %v225_v33, %s1205_s0  ;;  %v1005_v36 = vpop.f32.mrb[3].mxu1  ;;  %v230_v38 = vadd.f32 %v225_v33, %v159_v37 }
 0x4a9   :  { %v935_v39 = vmul.f32 -1.442695, %v230_v38  ;;  %v1073_v38 = vld [vmem:[#allocation6] sm:$0xff]  }
 0x4ab   :  { %1087 = vpow2.f32 %v935_v39  ;;  %v1074_v39 = vld [vmem:[#allocation6 + $0x8] sm:$0xff]  }
 0x4b5   :  { %v1088_v40 = vpop.eup %1087 }
 0x4b6   :  { %v234_v41 = vadd.f32 1.0, %v1088_v40 }
 0x4b8   :  { %1089 = vrcp.f32 %v234_v41 }
 0x4c2   :  { %v1090_v42 = vpop.eup %1089 }
 0x519   :  { %v239_v43 = vpop.permute.xlu0 %238 }
 0x51a   :  { %v241_v44 = vmul.f32 %v1090_v42, %v239_v43 }
 0x51c   :  { %243 = vrot.lane.b32.xlu1 %v241_v44, %s1205_s0 }
 0x58e   :  { %v244_v45 = vpop.permute.xlu1 %243 }
 0x58f   :  { %v246_v46 = vadd.f32 %v244_v45, %v159_v37 }
 0x591   :  { %1091 = vtanh.f32 %v246_v46 }
 0x59b   :  { %v1092_v47 = vpop.eup %1091 }
 0x59c   :  { %v248_v48 = vsub.f32 %v1287_v29, %v1092_v47 }
 0x59e   :  { %250 = vrot.lane.b32.xlu0 %v248_v48, %s1210_s13 }
 0x610   :  { %v251_v51 = vpop.permute.xlu0 %250 }
 0x611   :  { %v253_v52 = vmul.f32 %v1090_v42, %v251_v51  ;;  %v480_v51 = vld [vmem:[#allocation3 + $0x20] sm:$0xff] }
 0x613   :  { %255 = vrot.lane.b32.xlu1 %v253_v52, %s1209_s2 }
 0x685   :  { %v256_v53 = vpop.permute.xlu1 %255 }
 0x686   :  { %v1303_v54 = vadd.f32 %v1092_v47, %v256_v53 }
 0x688   :  { %v267_v55 = vpack.c.bf16 %v1303_v54, %v1303_v54 }
 0x68a   :  { %280 = vrot.lane.b32.xlu0 %v267_v55, %s1205_s0 }
 0x6fc   :  { %v281_v56 = vpop.permute.xlu0 %280 }
 0x6fd   :  { %1011 = vmatmul.mubr.msk.bf16.vlgmr.msra.gmra.mrb[4].mxu0 %vm48_vm0, %v281_v56 }
 0x6fe   :  { %1026 = vmatprep.mubr.msk.bf16.mxu0 %vm1208_vm1, %v1207_v0  ;;  %1023 = vmatpush3.bf16.msra.mxu0 %v1073_v38 }
 0x6ff   :  { %1024 = vmatprep.subr.bf16.mxu0 %v1207_v0 }
 0x702   :  { %1025 = vmatpush3.bf16.msra.mxu0 %v1074_v39 }
 0x703   :  { %1038 = vmatprep.subr.bf16.mxu0 %v1207_v0 }
 0x7d0   :  { %v331_v57 = vpop.f32.mrb[4].mxu0 }
 0x7d1   :  { %v332_v58 = vadd.f32 %v1277_v5, %v331_v57  ;;  %v1012_v59 = vpop.f32.mrb[5].mxu0 }
 0x7d2   :  { %v334_v60 = vpop.f32.mrb[6].mxu0 }
 0x7d3   :  { %345 = vrot.lane.b32.xlu1 %v332_v58, %s1205_s0  ;;  %v1013_v61 = vpop.f32.mrb[7].mxu0  ;;  %v337_v63 = vadd.f32 %v332_v58, %v266_v62 }
 0x7d5   :  { %v940_v1 = vmul.f32 -1.442695, %v337_v63 }
 0x7d7   :  { %1093 = vpow2.f32 %v940_v1  ;;  %v1075_v1 = vld [vmem:[#allocation6] sm:$0xff]  }
 0x7e1   :  { %v1094_v2 = vpop.eup %1093 }
 0x7e2   :  { %v341_v3 = vadd.f32 1.0, %v1094_v2  ;;  %v1076_v2 = vld [vmem:[#allocation6 + $0x8] sm:$0xff]  }
 0x7e4   :  { %1095 = vrcp.f32 %v341_v3 }
 0x7ee   :  { %v1096_v4 = vpop.eup %1095 }
 0x845   :  { %v346_v6 = vpop.permute.xlu1 %345 }
 0x846   :  { %v348_v7 = vmul.f32 %v1096_v4, %v346_v6 }
 0x848   :  { %350 = vrot.lane.b32.xlu0 %v348_v7, %s1205_s0 }
 0x8ba   :  { %v351_v8 = vpop.permute.xlu0 %350 }
 0x8bb   :  { %v353_v9 = vadd.f32 %v351_v8, %v266_v62 }
 0x8bd   :  { %1097 = vtanh.f32 %v353_v9 }
 0x8c7   :  { %v1098_v10 = vpop.eup %1097 }
 0x8c8   :  { %v355_v11 = vsub.f32 %v1303_v54, %v1098_v10 }
 0x8ca   :  { %357 = vrot.lane.b32.xlu1 %v355_v11, %s1210_s13 }
 0x93c   :  { %v358_v14 = vpop.permute.xlu1 %357 }
 0x93d   :  { %v360_v15 = vmul.f32 %v1096_v4, %v358_v14 }
 0x93f   :  { %362 = vrot.lane.b32.xlu0 %v360_v15, %s1209_s2  ;;  %v587_v15 = vld [vmem:[#allocation3 + $0x28] sm:$0xff] }
 0x9b1   :  { %v363_v16 = vpop.permute.xlu0 %362 }
 0x9b2   :  { %v1319_v17 = vadd.f32 %v1098_v10, %v363_v16 }
 0x9b4   :  { %v374_v18 = vpack.c.bf16 %v1319_v17, %v1319_v17 }
 0x9b6   :  { %387 = vrot.lane.b32.xlu1 %v374_v18, %s1205_s0 }
 0xa28   :  { %v388_v19 = vpop.permute.xlu1 %387 }
 0xa29   :  { %1019 = vmatmul.mubr.msk.bf16.vlgmr.msra.gmra.mrb[4].mxu1 %vm48_vm0, %v388_v19 }
 0xa2a   :  { %1034 = vmatprep.mubr.msk.bf16.mxu1 %vm1208_vm1, %v1207_v0  ;;  %1031 = vmatpush3.bf16.msra.mxu1 %v1075_v1 }
 0xa2b   :  { %1032 = vmatprep.subr.bf16.mxu1 %v1207_v0 }
 0xa2e   :  { %1033 = vmatpush3.bf16.msra.mxu1 %v1076_v2 }
 0xa2f   :  { %1046 = vmatprep.subr.bf16.mxu1 %v1207_v0 }
 0xafc   :  { %v438_v20 = vpop.f32.mrb[4].mxu1 }
 0xafd   :  { %v439_v21 = vadd.f32 %v1277_v5, %v438_v20  ;;  %v1020_v22 = vpop.f32.mrb[5].mxu1 }
 0xafe   :  { %v441_v23 = vpop.f32.mrb[6].mxu1 }
 0xaff   :  { %452 = vrot.lane.b32.xlu0 %v439_v21, %s1205_s0  ;;  %v1021_v24 = vpop.f32.mrb[7].mxu1  ;;  %v444_v26 = vadd.f32 %v439_v21, %v373_v25 }
 0xb01   :  { %v945_v27 = vmul.f32 -1.442695, %v444_v26 }
 0xb03   :  { %1099 = vpow2.f32 %v945_v27 }
 0xb0d   :  { %v1100_v28 = vpop.eup %1099 }
 0xb0e   :  { %v448_v30 = vadd.f32 1.0, %v1100_v28  ;;  %v1077_v28 = vld [vmem:[#allocation6] sm:$0xff]  }
 0xb10   :  { %1101 = vrcp.f32 %v448_v30  ;;  %v1078_v30 = vld [vmem:[#allocation6 + $0x8] sm:$0xff]  }
 0xb1a   :  { %v1102_v31 = vpop.eup %1101 }
 0xb71   :  { %v453_v32 = vpop.permute.xlu0 %452 }
 0xb72   :  { %v455_v33 = vmul.f32 %v1102_v31, %v453_v32 }
 0xb74   :  { %457 = vrot.lane.b32.xlu1 %v455_v33, %s1205_s0 }
 0xbe6   :  { %v458_v34 = vpop.permute.xlu1 %457 }
 0xbe7   :  { %v460_v35 = vadd.f32 %v458_v34, %v373_v25 }
 0xbe9   :  { %1103 = vtanh.f32 %v460_v35 }
 0xbf3   :  { %v1104_v36 = vpop.eup %1103 }
 0xbf4   :  { %v462_v37 = vsub.f32 %v1319_v17, %v1104_v36 }
 0xbf6   :  { %464 = vrot.lane.b32.xlu0 %v462_v37, %s1210_s13 }
 0xc68   :  { %v465_v40 = vpop.permute.xlu0 %464 }
 0xc69   :  { %v467_v41 = vmul.f32 %v1102_v31, %v465_v40 }
 0xc6b   :  { %469 = vrot.lane.b32.xlu1 %v467_v41, %s1209_s2 }
 0xcdd   :  { %v470_v42 = vpop.permute.xlu1 %469 }
 0xcde   :  { %v1335_v43 = vadd.f32 %v1104_v36, %v470_v42  ;;  %v694_v42 = vld [vmem:[#allocation3 + $0x30] sm:$0xff] }
 0xce0   :  { %v481_v44 = vpack.c.bf16 %v1335_v43, %v1335_v43 }
 0xce2   :  { %494 = vrot.lane.b32.xlu0 %v481_v44, %s1205_s0 }
 0xd54   :  { %v495_v45 = vpop.permute.xlu0 %494 }
 0xd55   :  { %1027 = vmatmul.mubr.msk.bf16.vlgmr.msra.gmra.mrb[8].mxu0 %vm48_vm0, %v495_v45 }
 0xd56   :  { %1042 = vmatprep.mubr.msk.bf16.mxu0 %vm1208_vm1, %v1207_v0  ;;  %1039 = vmatpush3.bf16.msra.mxu0 %v1077_v28 }
 0xd57   :  { %1040 = vmatprep.subr.bf16.mxu0 %v1207_v0 }
 0xd5a   :  { %1041 = vmatpush3.bf16.msra.mxu0 %v1078_v30 }
 0xe28   :  { %v545_v46 = vpop.f32.mrb[8].mxu0 }
 0xe29   :  { %v546_v47 = vadd.f32 %v1277_v5, %v545_v46  ;;  %v1028_v48 = vpop.f32.mrb[9].mxu0 }
 0xe2a   :  { %v548_v49 = vpop.f32.mrb[10].mxu0 }
 0xe2b   :  { %559 = vrot.lane.b32.xlu1 %v546_v47, %s1205_s0  ;;  %v1029_v50 = vpop.f32.mrb[11].mxu0  ;;  %v551_v52 = vadd.f32 %v546_v47, %v480_v51 }
 0xe2d   :  { %v950_v53 = vmul.f32 -1.442695, %v551_v52 }
 0xe2f   :  { %1105 = vpow2.f32 %v950_v53 }
 0xe39   :  { %v1106_v55 = vpop.eup %1105 }
 0xe3a   :  { %v555_v56 = vadd.f32 1.0, %v1106_v55 }
 0xe3c   :  { %1107 = vrcp.f32 %v555_v56  ;;  %v1079_v56 = vld [vmem:[#allocation6] sm:$0xff]  }
 0xe46   :  { %v1108_v57 = vpop.eup %1107 }
 0xe9d   :  { %v560_v58 = vpop.permute.xlu1 %559 }
 0xe9e   :  { %v562_v59 = vmul.f32 %v1108_v57, %v560_v58 }
 0xea0   :  { %564 = vrot.lane.b32.xlu0 %v562_v59, %s1205_s0 }
 0xf12   :  { %v565_v60 = vpop.permute.xlu0 %564 }
 0xf13   :  { %v567_v61 = vadd.f32 %v565_v60, %v480_v51 }
 0xf15   :  { %1109 = vtanh.f32 %v567_v61 }
 0xf1f   :  { %v1110_v62 = vpop.eup %1109 }
 0xf20   :  { %v569_v63 = vsub.f32 %v1335_v43, %v1110_v62 }
 0xf22   :  { %571 = vrot.lane.b32.xlu1 %v569_v63, %s1210_s13 }
 0xf94   :  { %v572_v3 = vpop.permute.xlu1 %571 }
 0xf95   :  { %v574_v4 = vmul.f32 %v1108_v57, %v572_v3  ;;  %v1080_v57 = vld [vmem:[#allocation6 + $0x8] sm:$0xff]  }
 0xf97   :  { %576 = vrot.lane.b32.xlu0 %v574_v4, %s1209_s2 }
0x1009   :  { %v577_v6 = vpop.permute.xlu0 %576 }
0x100a   :  { %v1351_v7 = vadd.f32 %v1110_v62, %v577_v6  ;;  %v801_v6 = vld [vmem:[#allocation3 + $0x38] sm:$0xff] }
0x100c   :  { %v588_v8 = vpack.c.bf16 %v1351_v7, %v1351_v7 }
0x100e   :  { %601 = vrot.lane.b32.xlu1 %v588_v8, %s1205_s0 }
0x1080   :  { %v602_v9 = vpop.permute.xlu1 %601 }
0x1081   :  { %1035 = vmatmul.mubr.msk.bf16.vlgmr.msra.gmra.mrb[8].mxu1 %vm48_vm0, %v602_v9 }
0x1082   :  { %1050 = vmatprep.mubr.msk.bf16.mxu1 %vm1208_vm1, %v1207_v0  ;;  %1047 = vmatpush3.bf16.msra.mxu1 %v1079_v56 }
0x1083   :  { %1048 = vmatprep.subr.bf16.mxu1 %v1207_v0 }
0x1086   :  { %1049 = vmatpush3.bf16.msra.mxu1 %v1080_v57 }
0x1154   :  { %v652_v10 = vpop.f32.mrb[8].mxu1 }
0x1155   :  { %v653_v11 = vadd.f32 %v1277_v5, %v652_v10  ;;  %v1036_v12 = vpop.f32.mrb[9].mxu1 }
0x1156   :  { %v655_v13 = vpop.f32.mrb[10].mxu1 }
0x1157   :  { %666 = vrot.lane.b32.xlu0 %v653_v11, %s1205_s0  ;;  %v1037_v14 = vpop.f32.mrb[11].mxu1  ;;  %v658_v16 = vadd.f32 %v653_v11, %v587_v15 }
0x1159   :  { %v955_v18 = vmul.f32 -1.442695, %v658_v16 }
0x115b   :  { %1111 = vpow2.f32 %v955_v18 }
0x1165   :  { %v1112_v19 = vpop.eup %1111 }
0x1166   :  { %v662_v20 = vadd.f32 1.0, %v1112_v19 }
0x1168   :  { %1113 = vrcp.f32 %v662_v20 }
0x1172   :  { %v1114_v21 = vpop.eup %1113 }
0x11c9   :  { %v667_v22 = vpop.permute.xlu0 %666 }
0x11ca   :  { %v669_v23 = vmul.f32 %v1114_v21, %v667_v22 }
0x11cc   :  { %671 = vrot.lane.b32.xlu1 %v669_v23, %s1205_s0 }
0x123e   :  { %v672_v24 = vpop.permute.xlu1 %671 }
0x123f   :  { %v674_v25 = vadd.f32 %v672_v24, %v587_v15 }
0x1241   :  { %1115 = vtanh.f32 %v674_v25 }
0x124b   :  { %v1116_v26 = vpop.eup %1115 }
0x124c   :  { %v676_v27 = vsub.f32 %v1351_v7, %v1116_v26 }
0x124e   :  { %678 = vrot.lane.b32.xlu0 %v676_v27, %s1210_s13 }
0x12c0   :  { %v679_v31 = vpop.permute.xlu0 %678 }
0x12c1   :  { %v681_v32 = vmul.f32 %v1114_v21, %v679_v31 }
0x12c3   :  { %683 = vrot.lane.b32.xlu1 %v681_v32, %s1209_s2 }
0x1335   :  { %v684_v33 = vpop.permute.xlu1 %683 }
0x1336   :  { %v1366_v34 = vadd.f32 %v1116_v26, %v684_v33 }
0x1338   :  { %v695_v35 = vpack.c.bf16 %v1366_v34, %v1366_v34 }
0x133a   :  { %708 = vrot.lane.b32.xlu0 %v695_v35, %s1205_s0 }
0x13ac   :  { %v709_v36 = vpop.permute.xlu0 %708 }
0x13ad   :  { %1043 = vmatmul.mubr.msk.bf16.vlgmr.msra.gmra.mrb[12].mxu0 %vm48_vm0, %v709_v36 }
0x1480   :  { %v759_v37 = vpop.f32.mrb[12].mxu0 }
0x1481   :  { %v760_v38 = vadd.f32 %v1277_v5, %v759_v37  ;;  %v1044_v39 = vpop.f32.mrb[13].mxu0 }
0x1482   :  { %v762_v40 = vpop.f32.mrb[14].mxu0 }
0x1483   :  { %773 = vrot.lane.b32.xlu1 %v760_v38, %s1205_s0  ;;  %v1045_v41 = vpop.f32.mrb[15].mxu0  ;;  %v765_v44 = vadd.f32 %v760_v38, %v694_v42 }
0x1485   :  { %v960_v45 = vmul.f32 -1.442695, %v765_v44 }
0x1487   :  { %1117 = vpow2.f32 %v960_v45 }
0x1491   :  { %v1118_v46 = vpop.eup %1117 }
0x1492   :  { %v769_v47 = vadd.f32 1.0, %v1118_v46 }
0x1494   :  { %1119 = vrcp.f32 %v769_v47 }
0x149e   :  { %v1120_v48 = vpop.eup %1119 }
0x14f5   :  { %v774_v49 = vpop.permute.xlu1 %773 }
0x14f6   :  { %v776_v50 = vmul.f32 %v1120_v48, %v774_v49 }
0x14f8   :  { %778 = vrot.lane.b32.xlu0 %v776_v50, %s1205_s0 }
0x156a   :  { %v779_v51 = vpop.permute.xlu0 %778 }
0x156b   :  { %v781_v52 = vadd.f32 %v779_v51, %v694_v42 }
0x156d   :  { %1121 = vtanh.f32 %v781_v52 }
0x1577   :  { %v1122_v53 = vpop.eup %1121 }
0x1578   :  { %v783_v55 = vsub.f32 %v1366_v34, %v1122_v53 }
0x157a   :  { %785 = vrot.lane.b32.xlu1 %v783_v55, %s1210_s13 }
0x15ec   :  { %v786_v58 = vpop.permute.xlu1 %785 }
0x15ed   :  { %v788_v59 = vmul.f32 %v1120_v48, %v786_v58 }
0x15ef   :  { %790 = vrot.lane.b32.xlu0 %v788_v59, %s1209_s2 }
0x1661   :  { %v791_v60 = vpop.permute.xlu0 %790 }
0x1662   :  { %v793_v61 = vadd.f32 %v1122_v53, %v791_v60 }
0x1664   :  { %v802_v62 = vpack.c.bf16 %v793_v61, %v793_v61 }
0x1666   :  { %815 = vrot.lane.b32.xlu1 %v802_v62, %s1205_s0 }
0x16d8   :  { %v816_v63 = vpop.permute.xlu1 %815 }
0x16d9   :  { %1051 = vmatmul.mubr.msk.bf16.vlgmr.msra.gmra.mrb[12].mxu1 %vm48_vm0, %v816_v63 }
0x17ac   :  { %v866_v1 = vpop.f32.mrb[12].mxu1 }
0x17ad   :  { %v867_v2 = vadd.f32 %v1277_v5, %v866_v1  ;;  %v1052_v3 = vpop.f32.mrb[13].mxu1 }
0x17ae   :  { %v869_v4 = vpop.f32.mrb[14].mxu1 }
0x17af   :  { %880 = vrot.lane.b32.xlu0 %v867_v2, %s1205_s0  ;;  %v1053_v0 = vpop.f32.mrb[15].mxu1  ;;  %v872_v8 = vadd.f32 %v867_v2, %v801_v6 }
0x17b1   :  { %v965_v9 = vmul.f32 -1.442695, %v872_v8 }
0x17b3   :  { %1123 = vpow2.f32 %v965_v9 }
0x17bd   :  { %v1124_v10 = vpop.eup %1123 }
0x17be   :  { %v876_v11 = vadd.f32 1.0, %v1124_v10 }
0x17c0   :  { %1125 = vrcp.f32 %v876_v11 }
0x17ca   :  { %v1126_v12 = vpop.eup %1125 }
0x1821   :  { %v881_v13 = vpop.permute.xlu0 %880 }
0x1822   :  { %v883_v14 = vmul.f32 %v1126_v12, %v881_v13 }
0x1824   :  { %885 = vrot.lane.b32.xlu1 %v883_v14, %s1205_s0 }
0x1896   :  { %v886_v15 = vpop.permute.xlu1 %885 }
0x1897   :  { %v888_v16 = vadd.f32 %v886_v15, %v801_v6 }
0x1899   :  { %1127 = vtanh.f32 %v888_v16 }
0x18a3   :  { %v1128_v5 = vpop.eup %1127 }
0x18a4   :  { %v890_v18 = vsub.f32 %v793_v61, %v1128_v5 }
0x18a6   :  { %892 = vrot.lane.b32.xlu0 %v890_v18, %s1210_s13 }
0x18aa   :  { %154 = vrot.lane.b32.xlu0 %v1287_v29, %s1205_s0 }
0x18ae   :  { %367 = vrot.lane.b32.xlu0 %v1319_v17, %s1205_s0 }
0x18b2   :  { %581 = vrot.lane.b32.xlu0 %v1351_v7, %s1205_s0 }
0x18b6   :  { %795 = vrot.lane.b32.xlu0 %v793_v61, %s1205_s0 }
0x1918   :  { %v893_v19 = vpop.permute.xlu0 %892 }
0x1919   :  { %v895_v20 = vmul.f32 %v1126_v12, %v893_v19 }
0x191b   :  { %897 = vrot.lane.b32.xlu1 %v895_v20, %s1209_s2 }
0x191c   :  { %v155_v21 = vpop.permute.xlu0 %154 }
0x191d   :  { %157 = vst.msk [vmem:[#allocation8] sm:$0xff] %vm48_vm0, %v155_v21 }
0x191f   :  { %260 = vrot.lane.b32.xlu1 %v1303_v54, %s1205_s0 }
0x1920   :  { %v368_v22 = vpop.permute.xlu0 %367 }
0x1921   :  { %371 = vst.msk [vmem:[#allocation8 + $0x10] sm:$0xff] %vm48_vm0, %v368_v22 }
0x1923   :  { %474 = vrot.lane.b32.xlu1 %v1335_v43, %s1205_s0 }
0x1924   :  { %v582_v29 = vpop.permute.xlu0 %581 }
0x1925   :  { %585 = vst.msk [vmem:[#allocation8 + $0x20] sm:$0xff] %vm48_vm0, %v582_v29 }
0x1927   :  { %688 = vrot.lane.b32.xlu1 %v1366_v34, %s1205_s0 }
0x1928   :  { %v796_v17 = vpop.permute.xlu0 %795 }
0x1929   :  { %799 = vst.msk [vmem:[#allocation8 + $0x30] sm:$0xff] %vm48_vm0, %v796_v17 }
0x198d   :  { %v898_v7 = vpop.permute.xlu1 %897 }
0x198e   :  { %v900_v23 = vadd.f32 %v1128_v5, %v898_v7 }
0x1990   :  { %902 = vrot.lane.b32.xlu1 %v900_v23, %s1205_s0 }
0x1991   :  { %v261_v54 = vpop.permute.xlu1 %260 }
0x1992   :  { %264 = vst.msk [vmem:[#allocation8 + $0x8] sm:$0xff] %vm48_vm0, %v261_v54 }
0x1995   :  { %v475_v24 = vpop.permute.xlu1 %474 }
0x1996   :  { %478 = vst.msk [vmem:[#allocation8 + $0x18] sm:$0xff] %vm48_vm0, %v475_v24 }
0x1999   :  { %v689_v43 = vpop.permute.xlu1 %688 }
0x199a   :  { %692 = vst.msk [vmem:[#allocation8 + $0x28] sm:$0xff] %vm48_vm0, %v689_v43 }
0x1a02   :  { %v903_v25 = vpop.permute.xlu1 %902 }
0x1a03   :  { %906 = vst.msk [vmem:[#allocation8 + $0x38] sm:$0xff] %vm48_vm0, %v903_v25  ;;  %907 = vst.msk [vmem:[#allocation2] sm:$0xff] %vm48_vm0, %v903_v25 }
0x1a04   :  { %1184 = shalt.err (!%p1181_p6)
}
0x1a05   :  { %s1185_s19 = scalar_lea.hbm %s1427_s3, 1024 }
0x1a06   :  { %p1186_p7 = scmp.ne.s32.totalorder %s1427_s3, %s1185_s19  ;;  %p1189_p8 = scmp.lt.u32.totalorder %s1185_s19, %s1427_s3 }
0x1a08   :  { %p1191_p9 = pnand %p1189_p8, %p1186_p7 }
0x1a0a   :  { %1194 = shalt.err (!%p1191_p9)
}
0x1a0b   :  { %919 = dma.vmem_to_hbm [thread:$0]  %s914_s15, 1024, %s1427_s3, [#allocation5], %s1202_s22, %s1202_s22, %s1203_s23  }
0x1a0c   :  { %1199 = dma.done.wait [#allocation5], 1024  }
0x1a0d   :  { %1200 = vsyncadd [#allocation5], 4294966272 }
0x1a0e   :  { %923 = vsyncpa [#allocation4], 1 }
0x1a0f   :  { %924 = vsyncpa [#allocation7], 1 }
0x1a10   :  { %925 = vsyncpa [#allocation5], 1 }

</bundles_post_ra>
